<compile_context>
chip_gen: v5e
topology: v5e:2x2
jax: 0.10.0
libtpu: 0.0.40
codegen_flags: <defaults>
</compile_context>

<pallas_src>
import functools

import jax
import jax.numpy as jnp
from jax.experimental import pallas as pl
from jax.experimental.pallas import tpu as pltpu

EPS = 1e-5
VMEM_LIMIT_BYTES = 48 * 1024 * 1024  # leave headroom under v7x's 64 MiB VMEM


def _cparams(semantics):
    return pltpu.CompilerParams(dimension_semantics=semantics,
                                vmem_limit_bytes=VMEM_LIMIT_BYTES)


def _pick_tile_rows(rows, target=512):
    """Largest multiple of 8 that divides `rows` and is <= target (else rows)."""
    for cand in range(min(target, rows), 7, -1):
        if cand % 8 == 0 and rows % cand == 0:
            return cand
    return rows


# ---------------------------------------------------------------------------
# Kernel 1: 1x1 conv (matmul) + BN1 sum/sumsq accumulation.
#   x_ref: (TR, Cin) bf16, w_ref: (Cin, Cmid) bf16
#   y_ref: (TR, Cmid) bf16, s_ref: (2, Cmid) f32 accumulator (row0=sum, row1=sumsq)
# ---------------------------------------------------------------------------
def _matmul_stats_kernel(x_ref, w_ref, y_ref, s_ref):
    i = pl.program_id(0)
    y = jnp.dot(x_ref[...], w_ref[...], preferred_element_type=jnp.float32)
    y_ref[...] = y.astype(y_ref.dtype)

    @pl.when(i == 0)
    def _():
        s_ref[...] = jnp.zeros_like(s_ref)

    s_ref[0:1, :] += jnp.sum(y, axis=0, keepdims=True)
    s_ref[1:2, :] += jnp.sum(y * y, axis=0, keepdims=True)


# ---------------------------------------------------------------------------
# Kernel 2: fused BN1-normalize + ReLU + 3x3 conv (9 accumulated matmuls on a
# 1-pixel-halo image tile) + BN2 sum/sumsq accumulation.
#   y1p_ref : (1, H+2, W+2, Cmid) bf16   pre-BN conv1 output, padded (values in
#                                        the halo ring are masked to zero here)
#   s1_ref  : (2, Cmid) f32              BN1 sum/sumsq
#   g_ref/b_ref : (1, Cmid) f32          BN1 gamma/beta
#   mask_ref: (H+2, W+2, 1) f32          1 in the interior, 0 on the halo ring
#   w_ref   : (9, Cmid, Cmid) bf16       w2 taps, [ky*3+kx] -> (Cin, Cout)
#   y2_ref  : (1, H, W, Cmid) bf16, s2_ref: (2, Cmid) f32 accumulator
# ---------------------------------------------------------------------------
def _bn_relu_conv3x3_stats_kernel(y1p_ref, s1_ref, g_ref, b_ref, mask_ref,
                                  w_ref, y2_ref, s2_ref, *, rows, H, W):
    n = pl.program_id(0)

    # BN1 params from accumulated stats (var = E[y^2] - mean^2, f32).
    mean = s1_ref[0:1, :] / rows
    var = s1_ref[1:2, :] / rows - mean * mean
    rstd = jax.lax.rsqrt(var + EPS)
    scale = rstd * g_ref[...]                    # (1, C)
    shift = b_ref[...] - mean * scale            # (1, C)

    y1p = y1p_ref[0].astype(jnp.float32)         # (H+2, W+2, C)
    a1 = jnp.maximum(y1p * scale + shift, 0.0) * mask_ref[...]   # zero halo ring
    a1 = a1.astype(jnp.bfloat16)
    C = a1.shape[-1]
    Co = w_ref.shape[-1]

    acc = jnp.zeros((H * W, Co), jnp.float32)
    for k in range(9):                           # 9 shifted matmuls, MXU-accumulated
        ky, kx = k // 3, k % 3
        patch = a1[ky:ky + H, kx:kx + W, :].reshape(H * W, C)
        acc = acc + jnp.dot(patch, w_ref[k], preferred_element_type=jnp.float32)

    y2_ref[...] = acc.reshape(1, H, W, Co).astype(y2_ref.dtype)

    @pl.when(n == 0)
    def _():
        s2_ref[...] = jnp.zeros_like(s2_ref)

    s2_ref[0:1, :] += jnp.sum(acc, axis=0, keepdims=True)
    s2_ref[1:2, :] += jnp.sum(acc * acc, axis=0, keepdims=True)


# ---------------------------------------------------------------------------
# Kernel 3: fused BN2-normalize + ReLU + 1x1 conv (matmul) + BN3 stats.
# ---------------------------------------------------------------------------
def _bn_relu_matmul_stats_kernel(y_in_ref, s_in_ref, g_ref, b_ref, w_ref,
                                 y_out_ref, s_out_ref, *, rows):
    i = pl.program_id(0)
    mean = s_in_ref[0:1, :] / rows
    var = s_in_ref[1:2, :] / rows - mean * mean
    rstd = jax.lax.rsqrt(var + EPS)
    scale = rstd * g_ref[...]
    shift = b_ref[...] - mean * scale

    a = jnp.maximum(y_in_ref[...].astype(jnp.float32) * scale + shift, 0.0)
    y = jnp.dot(a.astype(jnp.bfloat16), w_ref[...],
                preferred_element_type=jnp.float32)
    y_out_ref[...] = y.astype(y_out_ref.dtype)

    @pl.when(i == 0)
    def _():
        s_out_ref[...] = jnp.zeros_like(s_out_ref)

    s_out_ref[0:1, :] += jnp.sum(y, axis=0, keepdims=True)
    s_out_ref[1:2, :] += jnp.sum(y * y, axis=0, keepdims=True)


# ---------------------------------------------------------------------------
# Kernel 4: BN3-normalize + residual add + ReLU (pure elementwise -> parallel).
# ---------------------------------------------------------------------------
def _bn_add_relu_kernel(y_ref, s_ref, g_ref, b_ref, id_ref, o_ref, *, rows):
    mean = s_ref[0:1, :] / rows
    var = s_ref[1:2, :] / rows - mean * mean
    rstd = jax.lax.rsqrt(var + EPS)
    scale = rstd * g_ref[...]
    shift = b_ref[...] - mean * scale
    z = y_ref[...].astype(jnp.float32) * scale + shift + id_ref[...]
    o_ref[...] = jnp.maximum(z, 0.0)


# ---------------------------------------------------------------------------
# Parameter init (deterministic, PyTorch-shaped conv weights OIHW) and the
# one-time weight prep (transposes / bf16 casts hoisted out of the forward).
# ---------------------------------------------------------------------------
def init_params(key, inchannel, outchannels):
    expansion = 4
    ks = jax.random.split(key, 12)

    def u(k, shape, fan_in):
        bound = 1.0 / (fan_in ** 0.5)
        return jax.random.uniform(k, shape, jnp.float32, -bound, bound)

    p = {}
    p["w1"] = u(ks[0], (outchannels, inchannel, 1, 1), inchannel)
    p["b1"] = u(ks[1], (outchannels,), inchannel)
    p["w2"] = u(ks[2], (outchannels, outchannels, 3, 3), outchannels * 9)
    p["b2"] = u(ks[3], (outchannels,), outchannels * 9)
    p["w3"] = u(ks[4], (outchannels * expansion, outchannels, 1, 1), outchannels)
    p["b3"] = u(ks[5], (outchannels * expansion,), outchannels)
    p["g1"] = 1.0 + 0.1 * jax.random.normal(ks[6], (outchannels,), jnp.float32)
    p["be1"] = 0.1 * jax.random.normal(ks[7], (outchannels,), jnp.float32)
    p["g2"] = 1.0 + 0.1 * jax.random.normal(ks[8], (outchannels,), jnp.float32)
    p["be2"] = 0.1 * jax.random.normal(ks[9], (outchannels,), jnp.float32)
    p["g3"] = 1.0 + 0.1 * jax.random.normal(ks[10], (outchannels * expansion,), jnp.float32)
    p["be3"] = 0.1 * jax.random.normal(ks[11], (outchannels * expansion,), jnp.float32)
    return p


def prepare_params(p):
    """One-time layout prep. Conv biases are intentionally dropped: they are
    exactly cancelled by the training-mode BN mean subtraction."""
    cmid_in = p["w2"].shape[1]
    cmid_out = p["w2"].shape[0]
    return {
        "w1": jnp.transpose(p["w1"][:, :, 0, 0]).astype(jnp.bfloat16),   # (Cin, Cmid)
        "w2": jnp.transpose(p["w2"], (2, 3, 1, 0))                       # (3,3,I,O)
                 .reshape(9, cmid_in, cmid_out).astype(jnp.bfloat16),    # (9, Cmid, Cmid)
        "w3": jnp.transpose(p["w3"][:, :, 0, 0]).astype(jnp.bfloat16),   # (Cmid, Cout)
        "g1": p["g1"].reshape(1, -1), "b1": p["be1"].reshape(1, -1),
        "g2": p["g2"].reshape(1, -1), "b2": p["be2"].reshape(1, -1),
        "g3": p["g3"].reshape(1, -1), "b3": p["be3"].reshape(1, -1),
    }


# ---------------------------------------------------------------------------
# Block forward (wrapper = layout glue only; all hot math is in Pallas).
# ---------------------------------------------------------------------------
def block_forward(x_nchw, prep, tile_rows=None):
    N, Cin, H, W = x_nchw.shape
    Cmid = prep["w1"].shape[1]
    Cout = prep["w3"].shape[1]
    assert Cin == Cout, "residual add requires inchannel == 4*outchannels"
    R = N * H * W
    TR = _pick_tile_rows(R) if tile_rows is None else tile_rows
    assert R % TR == 0 and (TR % 8 == 0 or TR == R)
    rows = float(R)

    x_nhwc = jnp.transpose(x_nchw, (0, 2, 3, 1)).astype(jnp.float32)     # NHWC
    x2d = x_nhwc.reshape(R, Cin)
    x2d_bf16 = x2d.astype(jnp.bfloat16)

    # ---- stage 1: conv1 (1x1) as row-tiled matmul + BN1 stats ------------
    y1, s1 = pl.pallas_call(
        _matmul_stats_kernel,
        grid=(R // TR,),
        in_specs=[pl.BlockSpec((TR, Cin), lambda i: (i, 0)),
                  pl.BlockSpec((Cin, Cmid), lambda i: (0, 0))],
        out_specs=(pl.BlockSpec((TR, Cmid), lambda i: (i, 0)),
                   pl.BlockSpec((2, Cmid), lambda i: (0, 0))),
        out_shape=(jax.ShapeDtypeStruct((R, Cmid), jnp.bfloat16),
                   jax.ShapeDtypeStruct((2, Cmid), jnp.float32)),
        compiler_params=_cparams(("arbitrary",)),
    )(x2d_bf16, prep["w1"])

    # ---- stage 2: fused BN1+ReLU and 3x3 conv (per-image halo tile) ------
    Hp, Wp = H + 2, W + 2
    y1_pad = jnp.pad(y1.reshape(N, H, W, Cmid),
                     ((0, 0), (1, 1), (1, 1), (0, 0)))       # halo; masked in-kernel
    mask = jnp.pad(jnp.ones((H, W, 1), jnp.float32),
                   ((1, 1), (1, 1), (0, 0)))                 # 1 interior, 0 ring

    y2, s2 = pl.pallas_call(
        functools.partial(_bn_relu_conv3x3_stats_kernel, rows=rows, H=H, W=W),
        grid=(N,),
        in_specs=[pl.BlockSpec((1, Hp, Wp, Cmid), lambda n: (n, 0, 0, 0)),
                  pl.BlockSpec((2, Cmid), lambda n: (0, 0)),
                  pl.BlockSpec((1, Cmid), lambda n: (0, 0)),
                  pl.BlockSpec((1, Cmid), lambda n: (0, 0)),
                  pl.BlockSpec((Hp, Wp, 1), lambda n: (0, 0, 0)),
                  pl.BlockSpec((9, Cmid, Cmid), lambda n: (0, 0, 0))],
        out_specs=(pl.BlockSpec((1, H, W, Cmid), lambda n: (n, 0, 0, 0)),
                   pl.BlockSpec((2, Cmid), lambda n: (0, 0))),
        out_shape=(jax.ShapeDtypeStruct((N, H, W, Cmid), jnp.bfloat16),
                   jax.ShapeDtypeStruct((2, Cmid), jnp.float32)),
        compiler_params=_cparams(("arbitrary",)),
    )(y1_pad, s1, prep["g1"], prep["b1"], mask, prep["w2"])

    # ---- stage 3: fused BN2+ReLU and conv3 (1x1) + BN3 stats -------------
    y2_2d = y2.reshape(R, Cmid)
    y3, s3 = pl.pallas_call(
        functools.partial(_bn_relu_matmul_stats_kernel, rows=rows),
        grid=(R // TR,),
        in_specs=[pl.BlockSpec((TR, Cmid), lambda i: (i, 0)),
                  pl.BlockSpec((2, Cmid), lambda i: (0, 0)),
                  pl.BlockSpec((1, Cmid), lambda i: (0, 0)),
                  pl.BlockSpec((1, Cmid), lambda i: (0, 0)),
                  pl.BlockSpec((Cmid, Cout), lambda i: (0, 0))],
        out_specs=(pl.BlockSpec((TR, Cout), lambda i: (i, 0)),
                   pl.BlockSpec((2, Cout), lambda i: (0, 0))),
        out_shape=(jax.ShapeDtypeStruct((R, Cout), jnp.bfloat16),
                   jax.ShapeDtypeStruct((2, Cout), jnp.float32)),
        compiler_params=_cparams(("arbitrary",)),
    )(y2_2d, s2, prep["g2"], prep["b2"], prep["w3"])

    # ---- stage 4: BN3 + residual + ReLU (elementwise, megacore-parallel) --
    out2d = pl.pallas_call(
        functools.partial(_bn_add_relu_kernel, rows=rows),
        grid=(R // TR,),
        in_specs=[pl.BlockSpec((TR, Cout), lambda i: (i, 0)),
                  pl.BlockSpec((2, Cout), lambda i: (0, 0)),
                  pl.BlockSpec((1, Cout), lambda i: (0, 0)),
                  pl.BlockSpec((1, Cout), lambda i: (0, 0)),
                  pl.BlockSpec((TR, Cout), lambda i: (i, 0))],
        out_specs=pl.BlockSpec((TR, Cout), lambda i: (i, 0)),
        out_shape=jax.ShapeDtypeStruct((R, Cout), jnp.float32),
        compiler_params=_cparams(("parallel",)),
    )(y3, s3, prep["g3"], prep["b3"], x2d)

    return jnp.transpose(out2d.reshape(N, H, W, Cout), (0, 3, 1, 2))     # NCHW


# ---------------------------------------------------------------------------
# Pure-JAX f32 reference (NCHW, training-mode BN, WITH conv biases) — also
# validates that the biases are cancelled by BN in the Pallas path.
# ---------------------------------------------------------------------------
def reference_forward(x, p):
    def bn(y, g, b):
        mean = y.mean(axis=(0, 2, 3), keepdims=True)
        var = ((y - mean) ** 2).mean(axis=(0, 2, 3), keepdims=True)
        return ((y - mean) * jax.lax.rsqrt(var + EPS)
                * g.reshape(1, -1, 1, 1) + b.reshape(1, -1, 1, 1))

    def conv(y, w, b, pad):
        out = jax.lax.conv_general_dilated(
            y, w, (1, 1), pad, dimension_numbers=("NCHW", "OIHW", "NCHW"))
        return out + b.reshape(1, -1, 1, 1)

    identity = x
    y = jax.nn.relu(bn(conv(x, p["w1"], p["b1"], "VALID"), p["g1"], p["be1"]))
    y = jax.nn.relu(bn(conv(y, p["w2"], p["b2"], [(1, 1), (1, 1)]), p["g2"], p["be2"]))
    y = bn(conv(y, p["w3"], p["b3"], "VALID"), p["g3"], p["be3"])
    return jax.nn.relu(y + identity)


if __name__ == "__main__":
    key = jax.random.PRNGKey(0)
    k_x, k_p = jax.random.split(key)

    N, H, W = 2, 16, 16
    outchannels = 4
    inchannel = outchannels * 4          # residual add requires matching channels

    x = jax.random.normal(k_x, (N, inchannel, H, W), jnp.float32)
    params = init_params(k_p, inchannel, outchannels)
    prep = prepare_params(params)        # weight transposes / bf16 casts, done once

    # tile_rows=128 forces multiple row tiles (R = 2*16*16 = 512) so the
    # sum/sumsq accumulation path is exercised; production default is 512.
    out = jax.block_until_ready(block_forward(x, prep, tile_rows=128))
    ref = jax.block_until_ready(reference_forward(x, params))

    assert out.shape == (N, outchannels * 4, H, W)
    # bf16 MXU operands / bf16 intermediates -> slightly looser tolerance.
    assert jnp.allclose(out, ref, rtol=5e-2, atol=5e-2), "mismatch vs reference"

    print("KERNEL_OK")
</pallas_src>

<mosaic_0001>
module attributes {stable_mosaic.version = 11 : i64} {
  func.func @_matmul_stats_kernel(%arg0: i32, %arg1: memref<128x16xbf16, #tpu.memory_space<vmem>>, %arg2: memref<16x4xbf16, #tpu.memory_space<vmem>>, %arg3: memref<128x4xbf16, #tpu.memory_space<vmem>>, %arg4: memref<2x4xf32, #tpu.memory_space<vmem>>) attributes {dimension_semantics = [#tpu.dimension_semantics<arbitrary>], iteration_bounds = array<i64: 4>, scalar_prefetch = 0 : i64, scratch_operands = 0 : i64, tpu.core_type = #tpu.core_type<tc>, window_params = [{transform_indices = @transform_0, window_bounds = array<i64: 128, 16>}, {pipeline_mode = #tpu.pipeline_mode<synchronous>, transform_indices = @transform_1, window_bounds = array<i64: 16, 4>}, {transform_indices = @transform_2, window_bounds = array<i64: 128, 4>}, {pipeline_mode = #tpu.pipeline_mode<synchronous>, transform_indices = @transform_3, window_bounds = array<i64: 2, 4>}]} {
    %c0 = arith.constant 0 : index
    %c0_0 = arith.constant 0 : index
    %0 = vector.load %arg1[%c0, %c0_0] : memref<128x16xbf16, #tpu.memory_space<vmem>>, vector<128x16xbf16>
    %c0_1 = arith.constant 0 : index
    %c0_2 = arith.constant 0 : index
    %1 = vector.load %arg2[%c0_1, %c0_2] : memref<16x4xbf16, #tpu.memory_space<vmem>>, vector<16x4xbf16>
    %cst = arith.constant dense<0.000000e+00> : vector<128x4xf32>
    %2 = tpu.matmul %0, %1, %cst {dimension_numbers = #tpu.dot_dimension_numbers<[1], [0], [0], [1], [0, 0, 1, 1], [], []>} : vector<128x16xbf16>, vector<16x4xbf16>, vector<128x4xf32> -> vector<128x4xf32>
    %3 = arith.truncf %2 : vector<128x4xf32> to vector<128x4xbf16>
    %c0_3 = arith.constant 0 : index
    %c0_4 = arith.constant 0 : index
    %4 = vector.load %arg3[%c0_3, %c0_4] : memref<128x4xbf16, #tpu.memory_space<vmem>>, vector<128x4xbf16>
    tpu.vector_store %arg3[%c0_3, %c0_4], %3 {strides = array<i32>} : memref<128x4xbf16, #tpu.memory_space<vmem>>, vector<128x4xbf16>,
    %c0_i32 = arith.constant 0 : i32
    %5 = arith.cmpi eq, %arg0, %c0_i32 : i32
    %6 = arith.extui %5 : i1 to i32
    %c0_i32_5 = arith.constant 0 : i32
    %7 = arith.cmpi ne, %6, %c0_i32_5 : i32
    scf.if %7 {
      %cst_15 = arith.constant 0.000000e+00 : f32
      %19 = vector.broadcast %cst_15 : f32 to vector<2x4xf32>
      %c0_16 = arith.constant 0 : index
      %c0_17 = arith.constant 0 : index
      %20 = vector.load %arg4[%c0_16, %c0_17] : memref<2x4xf32, #tpu.memory_space<vmem>>, vector<2x4xf32>
      tpu.vector_store %arg4[%c0_16, %c0_17], %19 {strides = array<i32>} : memref<2x4xf32, #tpu.memory_space<vmem>>, vector<2x4xf32>,
    } else {
    }
    %c0_6 = arith.constant 0 : index
    %c0_7 = arith.constant 0 : index
    %8 = vector.load %arg4[%c0_6, %c0_7] : memref<2x4xf32, #tpu.memory_space<vmem>>, vector<1x4xf32>
    %cst_8 = arith.constant dense<0.000000e+00> : vector<4xf32>
    %9 = vector.multi_reduction <add>, %2, %cst_8 [0] : vector<128x4xf32> to vector<4xf32>
    %10 = vector.shape_cast %9 : vector<4xf32> to vector<1x4xf32>
    %11 = arith.addf %8, %10 : vector<1x4xf32>
    %c0_9 = arith.constant 0 : index
    %c0_10 = arith.constant 0 : index
    %12 = vector.load %arg4[%c0_9, %c0_10] : memref<2x4xf32, #tpu.memory_space<vmem>>, vector<1x4xf32>
    tpu.vector_store %arg4[%c0_9, %c0_10], %11 {strides = array<i32>} : memref<2x4xf32, #tpu.memory_space<vmem>>, vector<1x4xf32>,
    %c1 = arith.constant 1 : index
    %c0_11 = arith.constant 0 : index
    %13 = vector.load %arg4[%c1, %c0_11] : memref<2x4xf32, #tpu.memory_space<vmem>>, vector<1x4xf32>
    %14 = arith.mulf %2, %2 : vector<128x4xf32>
    %cst_12 = arith.constant dense<0.000000e+00> : vector<4xf32>
    %15 = vector.multi_reduction <add>, %14, %cst_12 [0] : vector<128x4xf32> to vector<4xf32>
    %16 = vector.shape_cast %15 : vector<4xf32> to vector<1x4xf32>
    %17 = arith.addf %13, %16 : vector<1x4xf32>
    %c1_13 = arith.constant 1 : index
    %c0_14 = arith.constant 0 : index
    %18 = vector.load %arg4[%c1_13, %c0_14] : memref<2x4xf32, #tpu.memory_space<vmem>>, vector<1x4xf32>
    tpu.vector_store %arg4[%c1_13, %c0_14], %17 {strides = array<i32>} : memref<2x4xf32, #tpu.memory_space<vmem>>, vector<1x4xf32>,
    return
  }
  func.func @transform_0(%arg0: i32) -> (i32, i32) {
    %c0_i32 = arith.constant 0 : i32
    %c0_i32_0 = arith.constant 0 : i32
    return %arg0, %c0_i32 : i32, i32
  }
  func.func @transform_1(%arg0: i32) -> (i32, i32) {
    %c0_i32 = arith.constant 0 : i32
    %c0_i32_0 = arith.constant 0 : i32
    %c0_i32_1 = arith.constant 0 : i32
    return %c0_i32, %c0_i32_0 : i32, i32
  }
  func.func @transform_2(%arg0: i32) -> (i32, i32) {
    %c0_i32 = arith.constant 0 : i32
    %c0_i32_0 = arith.constant 0 : i32
    return %arg0, %c0_i32 : i32, i32
  }
  func.func @transform_3(%arg0: i32) -> (i32, i32) {
    %c0_i32 = arith.constant 0 : i32
    %c0_i32_0 = arith.constant 0 : i32
    %c0_i32_1 = arith.constant 0 : i32
    return %c0_i32, %c0_i32_0 : i32, i32
  }
}

</mosaic_0001>

<bundles_post_ra>
// kernel: tpu_custom_call.1
= control target key start
LH: loop header
LB: loop body
LE: loop exit
PB: predicated region body
PF: predicated region fallthrough
CT: control target
= control target key end

     0   :  { %9 = vsyncpa [#allocation3], 0  ;;  %s679_s12 = smov 0   ;;  %s858_s0 = inlined_call_operand.vmem [shape: bf16[512,16], index: 0, kind: input, shape index: {}]   ;;  %s859_s1 = inlined_call_operand.vmem [shape: bf16[16,4], index: 1, kind: input, shape index: {}]   ;;  %s860_s2 = inlined_call_operand.vmem [shape: bf16[512,4], index: 2, kind: output, shape index: {0}]   ;;  %s861_s3 = inlined_call_operand.hbm [shape: f32[2,4], index: 3, kind: output, shape index: {1}]  }
   0x1 LB: > { %s685_s13 = sadd.s32 4294967295, %s655_s12   ;;  %p535_p0 = scmp.ge.s32.totalorder %s655_s12, 1  ;;  %s655_s12 = sphi %s679_s12, %s15_s12  }
   0x2   : > { %p137_p1 = scmp.lt.s32.totalorder %s655_s12, 5 }
   0x4   : > { %p138_p2 = pnand %p535_p0, %p137_p1 }
   0x5   : > { %s536_s16 = sshll.u32 (!%p138_p2), %s685_s13, 4  ;;  %p584_p4 = scmp.ne.s32.totalorder (!%p138_p2), %s685_s13, 0 }
   0x6   : > { %141 = sbr.rel (%p138_p2) target bundleno = 230 (0xe6), region = 28  ;;  %p162_p3 = scmp.lt.s32.totalorder (!%p138_p2), %s536_s16, 63 }
   0xb   : > { %v597_v0 = vld [vmem:[%s859_s1] sm:$0xff]  ;;  %s863_s16 = smov (!%p162_p3, %s536_s16), 63  ;;  %vm238_vm0 = vcmask 130048   ;;  %vm328_vm1 = vcmask 27648  }
   0xc   : > { %270 = vmatpush.bf16.msra.mxu0 %v597_v0  ;;  %598 = vmatpush.bf16.msra.mxu1 %v597_v0  ;;  %s537_s17 = sshll.u32 %s863_s16, 2 }
   0xd   : > { %599 = vmatpush.bf16.msra.mxu2 %v597_v0  ;;  %600 = vmatpush.bf16.msra.mxu3 %v597_v0  ;;  %s165_s20 = scalar_lea.vmem %s858_s0, %s537_s17  ;;  %s707_s23 = scalar_lea.vmem %s860_s2, %s537_s17 }
   0xe   : > { %v589_v1 = vld [vmem:[%s165_s20] sm:$0xff]  ;;  %v591_v2 = vld [vmem:[%s165_s20 + $0x10] sm:$0xff]  ;;  %v590_v5 = vld [vmem:[%s165_s20 + $0x8] sm:$0xff] }
   0xf   : > { %v593_v3 = vld [vmem:[%s165_s20 + $0x20] sm:$0xff]  ;;  %v595_v4 = vld [vmem:[%s165_s20 + $0x30] sm:$0xff]  ;;  %576 = vmatmul.msk.bf16.vlgmr.msra.gmra.mxu0 %vm238_vm0, %v589_v1  ;;  %578 = vmatmul.msk.bf16.vlgmr.msra.gmra.mxu1 %vm238_vm0, %v591_v2  ;;  %v592_v6 = vld [vmem:[%s165_s20 + $0x18] sm:$0xff] }
  0x10   : > { %580 = vmatmul.msk.bf16.vlgmr.msra.gmra.mxu2 %vm238_vm0, %v593_v3  ;;  %582 = vmatmul.msk.bf16.vlgmr.msra.gmra.mxu3 %vm238_vm0, %v595_v4  ;;  %v594_v7 = vld [vmem:[%s165_s20 + $0x28] sm:$0xff]  ;;  %v596_v8 = vld [vmem:[%s165_s20 + $0x38] sm:$0xff] }
  0x1f   : > { %577 = vmatmul.msk.bf16.gmra.mxu0 %vm238_vm0, %v590_v5  ;;  %579 = vmatmul.msk.bf16.gmra.mxu1 %vm238_vm0, %v592_v6 }
  0x20   : > { %581 = vmatmul.msk.bf16.gmra.mxu2 %vm238_vm0, %v594_v7  ;;  %583 = vmatmul.msk.bf16.gmra.mxu3 %vm238_vm0, %v596_v8 }
  0x8c   : > { %v709_v9 = vpop.f32.mrf.mxu0  ;;  %v711_v10 = vpop.f32.mrf.mxu1 }
  0x8d   : > { %v312_v11 = vpack.c.bf16 %v709_v9, %v709_v9  ;;  %v316_v12 = vpack.c.bf16 %v711_v10, %v711_v10 }
  0x8f   : > { %329 = vst.msk [vmem:[%s707_s23] sm:$0xf] %vm328_vm1, %v312_v11 }
  0x90   : > { %333 = vst.msk [vmem:[%s707_s23 + $0x10] sm:$0xf] %vm328_vm1, %v316_v12 }
  0x93   : > { %v721_v13 = vpop.f32.mrf.mxu2  ;;  %v723_v14 = vpop.f32.mrf.mxu3 }
  0x94   : > { %v320_v15 = vpack.c.bf16 %v721_v13, %v721_v13  ;;  %v324_v16 = vpack.c.bf16 %v723_v14, %v723_v14  ;;  %v274_v17 = vpop.f32.mrf.mxu0  ;;  %v729_v18 = vpop.f32.mrf.mxu1 }
  0x95   : > { %v313_v19 = vpack.c.bf16 %v274_v17, %v274_v17  ;;  %v317_v20 = vpack.c.bf16 %v729_v18, %v729_v18 }
  0x96   : > { %337 = vst.msk [vmem:[%s707_s23 + $0x20] sm:$0xf] %vm328_vm1, %v320_v15 }
  0x97   : > { %341 = vst.msk [vmem:[%s707_s23 + $0x30] sm:$0xf] %vm328_vm1, %v324_v16 }
  0x98   : > { %330 = vst.msk [vmem:[%s707_s23 + $0x4] sm:$0xf] %vm328_vm1, %v313_v19 }
  0x99   : > { %334 = vst.msk [vmem:[%s707_s23 + $0x14] sm:$0xf] %vm328_vm1, %v317_v20 }
  0x9b   : > { %v741_v21 = vpop.f32.mrf.mxu2  ;;  %v743_v22 = vpop.f32.mrf.mxu3 }
  0x9c   : > { %v321_v23 = vpack.c.bf16 %v741_v21, %v741_v21  ;;  %v325_v24 = vpack.c.bf16 %v743_v22, %v743_v22  ;;  %v277_v25 = vpop.f32.mrf.mxu0  ;;  %v287_v26 = vpop.f32.mrf.mxu1 }
  0x9d   : > { %v314_v27 = vpack.c.bf16 %v277_v25, %v277_v25  ;;  %v318_v28 = vpack.c.bf16 %v287_v26, %v287_v26 }
  0x9e   : > { %338 = vst.msk [vmem:[%s707_s23 + $0x24] sm:$0xf] %vm328_vm1, %v321_v23 }
  0x9f   : > { %342 = vst.msk [vmem:[%s707_s23 + $0x34] sm:$0xf] %vm328_vm1, %v325_v24 }
  0xa0   : > { %331 = vst.msk [vmem:[%s707_s23 + $0x8] sm:$0xf] %vm328_vm1, %v314_v27 }
  0xa1   : > { %335 = vst.msk [vmem:[%s707_s23 + $0x18] sm:$0xf] %vm328_vm1, %v318_v28 }
  0xa3   : > { %v757_v29 = vpop.f32.mrf.mxu2  ;;  %v759_v30 = vpop.f32.mrf.mxu3 }
  0xa4   : > { %v322_v31 = vpack.c.bf16 %v757_v29, %v757_v29  ;;  %v326_v32 = vpack.c.bf16 %v759_v30, %v759_v30  ;;  %v279_v33 = vpop.f32.mrf.mxu0  ;;  %v289_v34 = vpop.f32.mrf.mxu1 }
  0xa5   : > { %v315_v35 = vpack.c.bf16 %v279_v33, %v279_v33  ;;  %v319_v36 = vpack.c.bf16 %v289_v34, %v289_v34 }
  0xa6   : > { %339 = vst.msk [vmem:[%s707_s23 + $0x28] sm:$0xf] %vm328_vm1, %v322_v31 }
  0xa7   : > { %343 = vst.msk [vmem:[%s707_s23 + $0x38] sm:$0xf] %vm328_vm1, %v326_v32 }
  0xa8   : > { %332 = vst.msk [vmem:[%s707_s23 + $0xc] sm:$0xf] %vm328_vm1, %v315_v35 }
  0xa9   : > { %336 = vst.msk [vmem:[%s707_s23 + $0x1c] sm:$0xf] %vm328_vm1, %v319_v36 }
  0xab   : > { %v773_v37 = vpop.f32.mrf.mxu2  ;;  %v775_v38 = vpop.f32.mrf.mxu3  ;;  %348 = sbr.rel (%p584_p4) target bundleno = 178 (0xb2), region = 32 }
  0xac   : > { %v323_v39 = vpack.c.bf16 %v773_v37, %v773_v37  ;;  %v327_v40 = vpack.c.bf16 %v775_v38, %v775_v38 }
  0xae   : > { %340 = vst.msk [vmem:[%s707_s23 + $0x2c] sm:$0xf] %vm328_vm1, %v323_v39 }
  0xaf   : > { %344 = vst.msk [vmem:[%s707_s23 + $0x3c] sm:$0xf] %vm328_vm1, %v327_v40 }
  0xb0   : > { %vm349_vm2 = vcmask 25600   ;;  %v657_v41 = vmov 0.0  }
  0xb1   : > { %350 = vst.msk [vmem:[#allocation2] sm:$0x3] %vm349_vm2, %v657_v41 }
  0xb2 PF: > { %vm352_vm3 = vcmask 31744   ;;  %v394_v49 = vmul.f32 %v709_v9, %v709_v9  ;;  %v395_v50 = vmul.f32 %v274_v17, %v274_v17  ;;  %v396_v51 = vmul.f32 %v277_v25, %v277_v25  ;;  %s658_s24 = smov [#allocation2]   ;;  %s466_s28 = sshll.u32 %s861_s3, 4  ;;  %s467_s28 = int_to_ptr.hbm [resolvable:$true] %s466_s28 }
  0xb3   : > { %v353_v42 = vsel %vm352_vm3, %v709_v9, 0.0  ;;  %v354_v43 = vsel %vm352_vm3, %v274_v17, 0.0  ;;  %v356_v44 = vsel %vm352_vm3, %v277_v25, 0.0  ;;  %v358_v46 = vsel %vm352_vm3, %v279_v33, 0.0  ;;  %s464_s25 = sshll.u32 %s658_s24, 4  ;;  %p605_p5 = scmp.eq.s32.totalorder %s685_s13, 3  ;;  %s465_s25 = int_to_ptr.vmem [resolvable:$true] %s464_s25 }
  0xb4   : > { %v355_v45 = vadd.f32 %v354_v43, %v353_v42  ;;  %v360_v48 = vsel %vm352_vm3, %v711_v10, 0.0  ;;  %v362_v53 = vsel %vm352_vm3, %v729_v18, 0.0  ;;  %v397_v54 = vmul.f32 %v279_v33, %v279_v33 }
  0xb5   : > { %v364_v56 = vsel %vm352_vm3, %v287_v26, 0.0  ;;  %v398_v57 = vmul.f32 %v711_v10, %v711_v10  ;;  %v410_v58 = vsel %vm352_vm3, %v394_v49, 0.0  ;;  %v411_v59 = vsel %vm352_vm3, %v395_v50, 0.0 }
  0xb6   : > { %v357_v47 = vadd.f32 %v356_v44, %v355_v45  ;;  %v413_v60 = vsel %vm352_vm3, %v396_v51, 0.0  ;;  %v412_v62 = vadd.f32 %v411_v59, %v410_v58  ;;  %v366_v63 = vsel %vm352_vm3, %v289_v34, 0.0 }
  0xb7   : > { %v399_v0 = vmul.f32 %v729_v18, %v729_v18  ;;  %v415_v1 = vsel %vm352_vm3, %v397_v54, 0.0  ;;  %v368_v4 = vsel %vm352_vm3, %v721_v13, 0.0  ;;  %v400_v5 = vmul.f32 %v287_v26, %v287_v26 }
  0xb8   : > { %v359_v52 = vadd.f32 %v358_v46, %v357_v47  ;;  %v414_v3 = vadd.f32 %v413_v60, %v412_v62  ;;  %v417_v6 = vsel %vm352_vm3, %v398_v57, 0.0  ;;  %v370_v9 = vsel %vm352_vm3, %v741_v21, 0.0 }
  0xb9   : > { %v401_v10 = vmul.f32 %v289_v34, %v289_v34  ;;  %v419_v11 = vsel %vm352_vm3, %v399_v0, 0.0  ;;  %v372_v16 = vsel %vm352_vm3, %v757_v29, 0.0  ;;  %v402_v17 = vmul.f32 %v721_v13, %v721_v13 }
  0xba   : > { %v361_v55 = vadd.f32 %v360_v48, %v359_v52  ;;  %v416_v8 = vadd.f32 %v415_v1, %v414_v3  ;;  %v421_v18 = vsel %vm352_vm3, %v400_v5, 0.0  ;;  %v374_v23 = vsel %vm352_vm3, %v773_v37, 0.0  ;;  %v393_v5 = vld [vmem:[#allocation2 + $0x1] sm:$0x1] }
  0xbb   : > { %v403_v24 = vmul.f32 %v741_v21, %v741_v21  ;;  %v423_v25 = vsel %vm352_vm3, %v401_v10, 0.0  ;;  %v376_v28 = vsel %vm352_vm3, %v723_v14, 0.0  ;;  %v404_v13 = vmul.f32 %v757_v29, %v757_v29 }
  0xbc   : > { %v363_v61 = vadd.f32 %v362_v53, %v361_v55  ;;  %v418_v15 = vadd.f32 %v417_v6, %v416_v8  ;;  %v425_v31 = vsel %vm352_vm3, %v402_v17, 0.0  ;;  %v378_v34 = vsel %vm352_vm3, %v743_v22, 0.0 }
  0xbd   : > { %v405_v21 = vmul.f32 %v773_v37, %v773_v37  ;;  %v427_v35 = vsel %vm352_vm3, %v403_v24, 0.0  ;;  %v380_v40 = vsel %vm352_vm3, %v759_v30, 0.0  ;;  %v406_v29 = vmul.f32 %v723_v14, %v723_v14 }
  0xbe   : > { %v365_v2 = vadd.f32 %v364_v56, %v363_v61  ;;  %v420_v20 = vadd.f32 %v419_v11, %v418_v15  ;;  %v429_v41 = vsel %vm352_vm3, %v404_v13, 0.0  ;;  %v382_v44 = vsel %vm352_vm3, %v775_v38, 0.0 }
  0xbf   : > { %v407_v37 = vmul.f32 %v743_v22, %v743_v22  ;;  %v431_v45 = vsel %vm352_vm3, %v405_v21, 0.0  ;;  %v408_v48 = vmul.f32 %v759_v30, %v759_v30  ;;  %v433_v49 = vsel %vm352_vm3, %v406_v29, 0.0 }
  0xc0   : > { %v367_v7 = vadd.f32 %v366_v63, %v365_v2  ;;  %v422_v27 = vadd.f32 %v421_v18, %v420_v20  ;;  %v409_v51 = vmul.f32 %v775_v38, %v775_v38  ;;  %v351_v63 = vld [vmem:[#allocation2] sm:$0x1]  ;;  %vm391_vm4 = vcmask 24576  }
  0xc1   : > { %v435_v52 = vsel %vm352_vm3, %v407_v37, 0.0  ;;  %v437_v22 = vsel %vm352_vm3, %v408_v48, 0.0 }
  0xc2   : > { %v369_v12 = vadd.f32 %v368_v4, %v367_v7  ;;  %v424_v33 = vadd.f32 %v423_v25, %v422_v27  ;;  %v439_v57 = vsel %vm352_vm3, %v409_v51, 0.0 }
  0xc4   : > { %v371_v19 = vadd.f32 %v370_v9, %v369_v12  ;;  %v426_v39 = vadd.f32 %v425_v31, %v424_v33 }
  0xc6   : > { %v373_v26 = vadd.f32 %v372_v16, %v371_v19  ;;  %v428_v43 = vadd.f32 %v427_v35, %v426_v39 }
  0xc8   : > { %v375_v32 = vadd.f32 %v374_v23, %v373_v26  ;;  %v430_v47 = vadd.f32 %v429_v41, %v428_v43 }
  0xca   : > { %v377_v36 = vadd.f32 %v376_v28, %v375_v32  ;;  %v432_v50 = vadd.f32 %v431_v45, %v430_v47 }
  0xcc   : > { %v379_v42 = vadd.f32 %v378_v34, %v377_v36  ;;  %v434_v54 = vadd.f32 %v433_v49, %v432_v50 }
  0xce   : > { %v381_v46 = vadd.f32 %v380_v40, %v379_v42  ;;  %v436_v56 = vadd.f32 %v435_v52, %v434_v54 }
  0xd0   : > { %v383_v14 = vadd.f32 %v382_v44, %v381_v46  ;;  %v438_v59 = vadd.f32 %v437_v22, %v436_v56 }
  0xd2   : > { %v384_v53 = vrot.slane %v383_v14, 4  ;;  %v440_v60 = vadd.f32 %v439_v57, %v438_v59 }
  0xd4   : > { %v385_v55 = vadd.f32 %v384_v53, %v383_v14  ;;  %v441_v62 = vrot.slane %v440_v60, 4 }
  0xd6   : > { %v386_v58 = vrot.slane %v385_v55, 2  ;;  %v442_v38 = vadd.f32 %v441_v62, %v440_v60 }
  0xd8   : > { %v387_v30 = vadd.f32 %v386_v58, %v385_v55  ;;  %v443_v2 = vrot.slane %v442_v38, 2 }
  0xda   : > { %v388_v61 = vrot.slane %v387_v30, 1  ;;  %v444_v3 = vadd.f32 %v443_v2, %v442_v38 }
  0xdc   : > { %v389_v0 = vadd.f32 %v388_v61, %v387_v30  ;;  %v445_v4 = vrot.slane %v444_v3, 1 }
  0xde   : > { %v390_v1 = vadd.f32 %v389_v0, %v351_v63  ;;  %v446_v6 = vadd.f32 %v445_v4, %v444_v3 }
  0xe0   : > { %392 = vst.msk [vmem:[#allocation2] sm:$0x1] %vm391_vm4, %v390_v1  ;;  %v447_v7 = vadd.f32 %v446_v6, %v393_v5 }
  0xe2   : > { %448 = vst.msk [vmem:[#allocation2 + $0x1] sm:$0x1] %vm391_vm4, %v447_v7 }
  0xe3   : > { %602 = dma.vmem_to_hbm [thread:$0]  (%p605_p5), %s465_s25, 32, %s467_s28, [#allocation3]  }
  0xe4   : > { %650 = dma.done.wait (%p605_p5), [#allocation3], 32  }
  0xe5   : > { %652 = vsyncadd (%p605_p5), [#allocation3], 4294967264 }
  0xe6 PF: > { %s15_s12 = sadd.s32 1, %s655_s12  }
  0xe7   : > { %p12_p6 = scmp.ge.s32.totalorder %s15_s12, 6  }
  0xe9   :  { %14 = sbr.rel (!%p12_p6) target bundleno = 1 (0x1), region = 71 }
  0xee   :  { %488 = vsyncpa [#allocation3], 1 }
  0xef   :  { %490 = vsyncpa [#allocation3 + $0x1], 1 }

</bundles_post_ra>
